<compile_context>
chip_gen: v6e
topology: v6e:2x2x1
jax: 0.10.0
libtpu: 0.0.40
codegen_flags: <defaults>
</compile_context>

<pallas_src>
import functools

import jax
import jax.numpy as jnp
from jax.experimental import pallas as pl
from jax.experimental.pallas import tpu as pltpu

LANE = 128  # lane-dense output width; out_feats is padded up to this


def _round_up(x, m):
    return (x + m - 1) // m * m


def vae_encoder_kernel(x_ref, w1_ref, w23_ref, b23_ref, eps_ref,
                       z_ref, kl_ref, *, n_rows, out_feats, tm):
    i = pl.program_id(0)

    # h = relu(x_aug @ w1_aug): linear1 bias folded into w1 via the
    # ones-column appended to x in the wrapper.
    h = jnp.maximum(
        jnp.dot(x_ref[...], w1_ref[...], preferred_element_type=jnp.float32),
        0.0)                                                     # (TM, H)

    # Fused mu / log-sigma projection: one (TM, 256) matmul, lane-aligned halves.
    s = jnp.dot(h, w23_ref[...], preferred_element_type=jnp.float32) \
        + b23_ref[...]                                           # (TM, 256)
    mu = s[:, :LANE]                                             # (TM, 128)
    log_sigma = s[:, LANE:]                                      # (TM, 128)
    sigma = jnp.exp(log_sigma)

    # Reparameterized sample; lane-dense store (padded lanes sliced off outside).
    z_ref[...] = mu + sigma * eps_ref[...]

    # KL from the pre-exp logits, masked to the valid (row, feature) region.
    rows = jax.lax.broadcasted_iota(jnp.int32, (tm, LANE), 0) + i * tm
    cols = jax.lax.broadcasted_iota(jnp.int32, (tm, LANE), 1)
    valid = (rows < n_rows) & (cols < out_feats)
    term = sigma * sigma + mu * mu - log_sigma - 0.5
    partial = jnp.sum(jnp.where(valid, term, 0.0))

    # Accumulate across batch tiles in the resident SMEM scalar output.
    @pl.when(i == 0)
    def _():
        kl_ref[0, 0] = 0.0

    kl_ref[0, 0] += partial


def vae_encoder(x, w1, b1, w2, b2, w3, b3, eps, *, tm=None):
    """Returns (z, kl) matching PyTorch VAE_Encoder.forward (noise supplied)."""
    n, f = x.shape
    hid = w1.shape[1]
    out_feats = w2.shape[1]
    assert out_feats <= LANE

    # ---- operand packing / padding (pure layout plumbing, done in XLA) ----
    # Fold b1 into w1 via an augmented ones-column; pad K to a multiple of 8.
    k1 = _round_up(f + 1, 8)
    x_aug = jnp.concatenate([x, jnp.ones((n, 1), x.dtype)], axis=1)
    x_aug = jnp.pad(x_aug, ((0, 0), (0, k1 - (f + 1))))             # (n, K1)
    w1_aug = jnp.concatenate([w1, b1[None, :]], axis=0)
    w1_aug = jnp.pad(w1_aug, ((0, k1 - (f + 1)), (0, 0)))           # (K1, H)

    # Fuse the mu / log-sigma projections, each padded to 128 output lanes.
    pad_c = lambda a: jnp.pad(a, ((0, 0), (0, LANE - a.shape[-1])))
    w23 = jnp.concatenate([pad_c(w2), pad_c(w3)], axis=1)           # (H, 256)
    b23 = jnp.concatenate([pad_c(b2[None, :]), pad_c(b3[None, :])], axis=1)

    # Batch tiling: TM rows per grid step.
    if tm is None:
        tm = min(256, _round_up(n, 8))
    n_pad = _round_up(n, tm)
    num_tiles = n_pad // tm
    x_aug = jnp.pad(x_aug, ((0, n_pad - n), (0, 0)))
    eps_p = jnp.pad(eps, ((0, n_pad - n), (0, LANE - out_feats)))
    # TODO(synk): eps could be drawn in-kernel via pltpu.prng_seed/prng_random_bits
    # to drop this operand, if bit-parity with externally supplied noise is not needed.

    kernel = functools.partial(vae_encoder_kernel, n_rows=n,
                               out_feats=out_feats, tm=tm)

    z_pad, kl = pl.pallas_call(
        kernel,
        grid=(num_tiles,),
        in_specs=[
            pl.BlockSpec((tm, k1), lambda i: (i, 0)),            # x tile (+ones col)
            pl.BlockSpec((k1, hid), lambda i: (0, 0)),           # w1 (+b1 row)
            pl.BlockSpec((hid, 2 * LANE), lambda i: (0, 0)),     # w2|w3 fused, padded
            pl.BlockSpec((1, 2 * LANE), lambda i: (0, 0)),       # b2|b3 fused, padded
            pl.BlockSpec((tm, LANE), lambda i: (i, 0)),          # eps tile
        ],
        out_specs=(
            pl.BlockSpec((tm, LANE), lambda i: (i, 0)),          # z (lane-dense)
            pl.BlockSpec(memory_space=pltpu.MemorySpace.SMEM),   # kl scalar
        ),
        out_shape=(
            jax.ShapeDtypeStruct((n_pad, LANE), jnp.float32),
            jax.ShapeDtypeStruct((1, 1), jnp.float32),
        ),
        compiler_params=pltpu.CompilerParams(
            dimension_semantics=("arbitrary",)),  # KL accumulates sequentially
    )(x_aug, w1_aug, w23, b23, eps_p)

    return z_pad[:n, :out_feats], kl[0, 0]


def reference(x, w1, b1, w2, b2, w3, b3, eps):
    h = jnp.maximum(x @ w1 + b1, 0.0)
    mu = h @ w2 + b2
    sigma = jnp.exp(h @ w3 + b3)
    z = mu + sigma * eps
    kl = jnp.sum(sigma ** 2 + mu ** 2 - jnp.log(sigma) - 0.5)
    return z, kl


def _make_inputs(key, batch, feature_number, hid_feats, out_feats):
    kx, k1, k2, k3, k4, k5, k6, keps = jax.random.split(key, 8)
    x = jax.random.normal(kx, (batch, feature_number), jnp.float32)
    w1 = jax.random.normal(k1, (feature_number, hid_feats), jnp.float32) * 0.1
    b1 = jax.random.normal(k2, (hid_feats,), jnp.float32) * 0.1
    w2 = jax.random.normal(k3, (hid_feats, out_feats), jnp.float32) * 0.1
    b2 = jax.random.normal(k4, (out_feats,), jnp.float32) * 0.1
    w3 = jax.random.normal(k5, (hid_feats, out_feats), jnp.float32) * 0.1
    b3 = jax.random.normal(k6, (out_feats,), jnp.float32) * 0.1
    eps = jax.random.normal(keps, (batch, out_feats), jnp.float32)
    return x, w1, b1, w2, b2, w3, b3, eps


if __name__ == "__main__":
    feature_number, hid_feats, out_feats = 32, 64, 16
    key = jax.random.PRNGKey(0)
    k_small, k_big = jax.random.split(key)

    # Small case (single grid step), shapes consistent with the module.
    args = _make_inputs(k_small, 8, feature_number, hid_feats, out_feats)
    z, kl = vae_encoder(*args)
    jax.block_until_ready((z, kl))
    z_r, kl_r = reference(*args)
    assert z.shape == (8, out_feats)
    assert jnp.allclose(z, z_r, atol=3e-3, rtol=3e-3)
    assert jnp.allclose(kl, kl_r, rtol=3e-3, atol=5e-1)

    # Larger, non-multiple batch: exercises multiple grid steps + row masking.
    args = _make_inputs(k_big, 600, feature_number, hid_feats, out_feats)
    z, kl = vae_encoder(*args)
    jax.block_until_ready((z, kl))
    z_r, kl_r = reference(*args)
    assert z.shape == (600, out_feats)
    assert jnp.allclose(z, z_r, atol=3e-3, rtol=3e-3)
    assert jnp.allclose(kl, kl_r, rtol=3e-3, atol=5e-1)

    print("KERNEL_OK")
</pallas_src>

<mosaic_0001>
module attributes {stable_mosaic.version = 11 : i64} {
  func.func @vae_encoder_kernel(%arg0: i32, %arg1: memref<8x40xf32, #tpu.memory_space<vmem>>, %arg2: memref<40x64xf32, #tpu.memory_space<vmem>>, %arg3: memref<64x256xf32, #tpu.memory_space<vmem>>, %arg4: memref<1x256xf32, #tpu.memory_space<vmem>>, %arg5: memref<8x128xf32, #tpu.memory_space<vmem>>, %arg6: memref<8x128xf32, #tpu.memory_space<vmem>>, %arg7: memref<1x1xf32, #tpu.memory_space<smem>>) attributes {dimension_semantics = [#tpu.dimension_semantics<arbitrary>], iteration_bounds = array<i64: 1>, scalar_prefetch = 0 : i64, scratch_operands = 0 : i64, tpu.core_type = #tpu.core_type<tc>, window_params = [{transform_indices = @transform_0, window_bounds = array<i64: 8, 40>}, {pipeline_mode = #tpu.pipeline_mode<synchronous>, transform_indices = @transform_1, window_bounds = array<i64: 40, 64>}, {pipeline_mode = #tpu.pipeline_mode<synchronous>, transform_indices = @transform_2, window_bounds = array<i64: 64, 256>}, {pipeline_mode = #tpu.pipeline_mode<synchronous>, transform_indices = @transform_3, window_bounds = array<i64: 1, 256>}, {transform_indices = @transform_4, window_bounds = array<i64: 8, 128>}, {transform_indices = @transform_5, window_bounds = array<i64: 8, 128>}, {transform_indices = @transform_6, window_bounds = array<i64: 1, 1>}]} {
    %c0 = arith.constant 0 : index
    %c0_0 = arith.constant 0 : index
    %0 = vector.load %arg1[%c0, %c0_0] : memref<8x40xf32, #tpu.memory_space<vmem>>, vector<8x40xf32>
    %c0_1 = arith.constant 0 : index
    %c0_2 = arith.constant 0 : index
    %1 = vector.load %arg2[%c0_1, %c0_2] : memref<40x64xf32, #tpu.memory_space<vmem>>, vector<40x64xf32>
    %cst = arith.constant dense<0.000000e+00> : vector<8x64xf32>
    %2 = tpu.matmul %0, %1, %cst {dimension_numbers = #tpu.dot_dimension_numbers<[1], [0], [0], [1], [0, 0, 1, 1], [], []>} : vector<8x40xf32>, vector<40x64xf32>, vector<8x64xf32> -> vector<8x64xf32>
    %cst_3 = arith.constant 0.000000e+00 : f32
    %3 = vector.broadcast %cst_3 : f32 to vector<8x64xf32>
    %4 = arith.maximumf %2, %3 : vector<8x64xf32>
    %c0_4 = arith.constant 0 : index
    %c0_5 = arith.constant 0 : index
    %5 = vector.load %arg3[%c0_4, %c0_5] : memref<64x256xf32, #tpu.memory_space<vmem>>, vector<64x256xf32>
    %cst_6 = arith.constant dense<0.000000e+00> : vector<8x256xf32>
    %6 = tpu.matmul %4, %5, %cst_6 {dimension_numbers = #tpu.dot_dimension_numbers<[1], [0], [0], [1], [0, 0, 1, 1], [], []>} : vector<8x64xf32>, vector<64x256xf32>, vector<8x256xf32> -> vector<8x256xf32>
    %c0_7 = arith.constant 0 : index
    %c0_8 = arith.constant 0 : index
    %7 = vector.load %arg4[%c0_7, %c0_8] : memref<1x256xf32, #tpu.memory_space<vmem>>, vector<1x256xf32>
    %8 = vector.broadcast %7 : vector<1x256xf32> to vector<8x256xf32>
    %9 = arith.addf %6, %8 : vector<8x256xf32>
    %10 = vector.extract_strided_slice %9 {offsets = [0, 0], sizes = [8, 128], strides = [1, 1]} : vector<8x256xf32> to vector<8x128xf32>
    %11 = vector.extract_strided_slice %9 {offsets = [0, 128], sizes = [8, 128], strides = [1, 1]} : vector<8x256xf32> to vector<8x128xf32>
    %12 = math.exp %11 : vector<8x128xf32>
    %c0_9 = arith.constant 0 : index
    %c0_10 = arith.constant 0 : index
    %13 = vector.load %arg5[%c0_9, %c0_10] : memref<8x128xf32, #tpu.memory_space<vmem>>, vector<8x128xf32>
    %14 = arith.mulf %12, %13 : vector<8x128xf32>
    %15 = arith.addf %10, %14 : vector<8x128xf32>
    %c0_11 = arith.constant 0 : index
    %c0_12 = arith.constant 0 : index
    %16 = vector.load %arg6[%c0_11, %c0_12] : memref<8x128xf32, #tpu.memory_space<vmem>>, vector<8x128xf32>
    tpu.vector_store %arg6[%c0_11, %c0_12], %15 {strides = array<i32>} : memref<8x128xf32, #tpu.memory_space<vmem>>, vector<8x128xf32>,
    %17 = tpu.iota {dimensions = array<i32: 0>} : vector<8x128xi32>
    %c8_i32 = arith.constant 8 : i32
    %18 = arith.muli %arg0, %c8_i32 : i32
    %19 = vector.broadcast %18 : i32 to vector<8x128xi32>
    %20 = arith.addi %17, %19 : vector<8x128xi32>
    %21 = tpu.iota {dimensions = array<i32: 1>} : vector<8x128xi32>
    %c8_i32_13 = arith.constant 8 : i32
    %22 = vector.broadcast %c8_i32_13 : i32 to vector<8x128xi32>
    %23 = arith.cmpi slt, %20, %22 : vector<8x128xi32>
    %c16_i32 = arith.constant 16 : i32
    %24 = vector.broadcast %c16_i32 : i32 to vector<8x128xi32>
    %25 = arith.cmpi slt, %21, %24 : vector<8x128xi32>
    %26 = arith.andi %23, %25 : vector<8x128xi1>
    %27 = arith.mulf %12, %12 : vector<8x128xf32>
    %28 = arith.mulf %10, %10 : vector<8x128xf32>
    %29 = arith.addf %27, %28 : vector<8x128xf32>
    %30 = arith.subf %29, %11 : vector<8x128xf32>
    %cst_14 = arith.constant 5.000000e-01 : f32
    %31 = vector.broadcast %cst_14 : f32 to vector<8x128xf32>
    %32 = arith.subf %30, %31 : vector<8x128xf32>
    %cst_15 = arith.constant 0.000000e+00 : f32
    %33 = vector.broadcast %cst_15 : f32 to vector<8x128xf32>
    %34 = arith.select %26, %32, %33 : vector<8x128xi1>, vector<8x128xf32>
    %35 = vector.shape_cast %34 : vector<8x128xf32> to vector<1x8x128xf32>
    %cst_16 = arith.constant dense<0.000000e+00> : vector<1xf32>
    %36 = vector.multi_reduction <add>, %35, %cst_16 [1, 2] : vector<1x8x128xf32> to vector<1xf32>
    %37 = vector.shape_cast %36 : vector<1xf32> to vector<1x1x1xf32>
    %38 = vector.extract %37[0, 0, 0] : f32 from vector<1x1x1xf32>
    %c0_i32 = arith.constant 0 : i32
    %39 = arith.cmpi eq, %arg0, %c0_i32 : i32
    %40 = arith.extui %39 : i1 to i32
    %c0_i32_17 = arith.constant 0 : i32
    %41 = arith.cmpi ne, %40, %c0_i32_17 : i32
    scf.if %41 {
      %cst_22 = arith.constant 0.000000e+00 : f32
      %c0_23 = arith.constant 0 : index
      %c0_24 = arith.constant 0 : index
      %45 = memref.load %arg7[%c0_23, %c0_24] : memref<1x1xf32, #tpu.memory_space<smem>>
      memref.store %cst_22, %arg7[%c0_23, %c0_24] : memref<1x1xf32, #tpu.memory_space<smem>>
    } else {
    }
    %c0_18 = arith.constant 0 : index
    %c0_19 = arith.constant 0 : index
    %42 = memref.load %arg7[%c0_18, %c0_19] : memref<1x1xf32, #tpu.memory_space<smem>>
    %43 = arith.addf %42, %38 : f32
    %c0_20 = arith.constant 0 : index
    %c0_21 = arith.constant 0 : index
    %44 = memref.load %arg7[%c0_20, %c0_21] : memref<1x1xf32, #tpu.memory_space<smem>>
    memref.store %43, %arg7[%c0_20, %c0_21] : memref<1x1xf32, #tpu.memory_space<smem>>
    return
  }
  func.func @transform_0(%arg0: i32) -> (i32, i32) {
    %c0_i32 = arith.constant 0 : i32
    %c0_i32_0 = arith.constant 0 : i32
    return %arg0, %c0_i32 : i32, i32
  }
  func.func @transform_1(%arg0: i32) -> (i32, i32) {
    %c0_i32 = arith.constant 0 : i32
    %c0_i32_0 = arith.constant 0 : i32
    %c0_i32_1 = arith.constant 0 : i32
    return %c0_i32, %c0_i32_0 : i32, i32
  }
  func.func @transform_2(%arg0: i32) -> (i32, i32) {
    %c0_i32 = arith.constant 0 : i32
    %c0_i32_0 = arith.constant 0 : i32
    %c0_i32_1 = arith.constant 0 : i32
    return %c0_i32, %c0_i32_0 : i32, i32
  }
  func.func @transform_3(%arg0: i32) -> (i32, i32) {
    %c0_i32 = arith.constant 0 : i32
    %c0_i32_0 = arith.constant 0 : i32
    %c0_i32_1 = arith.constant 0 : i32
    return %c0_i32, %c0_i32_0 : i32, i32
  }
  func.func @transform_4(%arg0: i32) -> (i32, i32) {
    %c0_i32 = arith.constant 0 : i32
    %c0_i32_0 = arith.constant 0 : i32
    return %arg0, %c0_i32 : i32, i32
  }
  func.func @transform_5(%arg0: i32) -> (i32, i32) {
    %c0_i32 = arith.constant 0 : i32
    %c0_i32_0 = arith.constant 0 : i32
    return %arg0, %c0_i32 : i32, i32
  }
  func.func @transform_6(%arg0: i32) -> (i32, i32) {
    %c0_i32 = arith.constant 0 : i32
    %c0_i32_0 = arith.constant 0 : i32
    %c0_i32_1 = arith.constant 0 : i32
    return %c0_i32, %c0_i32_0 : i32, i32
  }
}

</mosaic_0001>

<bundles_post_ra>
// kernel: tpu_custom_call.1
= control target key start
LH: loop header
LB: loop body
LE: loop exit
PB: predicated region body
PF: predicated region fallthrough
CT: control target
= control target key end

     0   :  { %12 = vsyncpa [#allocation3], 0  ;;  %s555_s0 = inlined_call_operand.hbm [shape: f32[8,40], index: 0, kind: input, shape index: {}]   ;;  %s556_s1 = inlined_call_operand.hbm [shape: f32[40,64], index: 1, kind: input, shape index: {}]   ;;  %s557_s2 = inlined_call_operand.hbm [shape: f32[64,256], index: 2, kind: input, shape index: {}]   ;;  %s558_s3 = inlined_call_operand.vmem [shape: f32[1,256], index: 3, kind: input, shape index: {}]   ;;  %s559_s4 = inlined_call_operand.hbm [shape: f32[8,128], index: 4, kind: input, shape index: {}]   ;;  %s560_s5 = inlined_call_operand.hbm [shape: f32[8,128], index: 5, kind: output, shape index: {0}]   ;;  %s561_s6 = inlined_call_operand.hbm [shape: f32[1,1], index: 6, kind: output, shape index: {1}]  }
   0x1   :  { %13 = vsyncpa [#allocation7], 0 }
   0x2   :  { %14 = vsyncpa [#allocation10], 0 }
   0x3   :  { %15 = vsyncpa [#allocation4], 0 }
   0x4   :  { %16 = vsyncpa [#allocation5], 0  ;;  %s487_s21 = smov [#allocation6]  }
   0x5   :  { %s32_s22 = sshll.u32 %s487_s21, 4  ;;  %s33_s22 = int_to_ptr.vmem [resolvable:$true] %s32_s22 }
   0x6   :  { %s377_s23 = scalar_lea.vmem %s33_s22, 640  ;;  %p382_p1 = scmp.lt.s32.totalorder %s33_s22, %s33_s22 }
   0x7   :  { %p378_p0 = scmp.ne.s32.totalorder %s33_s22, %s377_s23  ;;  %p383_p2 = scmp.lt.s32.totalorder %s377_s23, %s377_s23 }
   0x9   :  { %p384_p3 = por %p383_p2, %p382_p1 }
   0xb   :  { %p385_p4 = pnand %p384_p3, %p378_p0 }
   0xd   :  { %388 = shalt.err (!%p385_p4)
}
   0xe   :  { %s488_s24 = smov 128   ;;  %s489_s25 = smov 8  }
   0xf   :  { %38 = dma.hbm_to_vmem [thread:$0]  %s556_s1, 640, %s33_s22, [#allocation7], %s488_s24, %s488_s24, %s489_s25  }
  0x10   :  { %s490_s28 = smov [#allocation2]   ;;  %s491_s30 = smov [#allocation8]  }
  0x11   :  { %s23_s29 = sshll.u32 %s490_s28, 4  ;;  %s44_s7 = sshll.u32 %s491_s30, 4  ;;  %s24_s29 = int_to_ptr.vmem [resolvable:$true] %s23_s29  ;;  %s45_s7 = int_to_ptr.vmem [resolvable:$true] %s44_s7 }
  0x12   :  { %s397_s8 = scalar_lea.vmem %s24_s29, 128  ;;  %p402_p6 = scmp.lt.s32.totalorder %s24_s29, %s24_s29 }
  0x13   :  { %p398_p5 = scmp.ne.s32.totalorder %s24_s29, %s397_s8  ;;  %p403_p7 = scmp.lt.s32.totalorder %s397_s8, %s397_s8 }
  0x15   :  { %p404_p8 = por %p403_p7, %p402_p6 }
  0x17   :  { %p405_p9 = pnand %p404_p8, %p398_p5 }
  0x19   :  { %408 = shalt.err (!%p405_p9)
}
  0x1a   :  { %26 = dma.hbm_to_vmem [thread:$0]  %s555_s0, 128, %s24_s29, [#allocation3]  }
  0x1b   :  { %s417_s11 = scalar_lea.vmem %s45_s7, 2048  ;;  %p422_p11 = scmp.lt.s32.totalorder %s45_s7, %s45_s7 }
  0x1c   :  { %p418_p10 = scmp.ne.s32.totalorder %s45_s7, %s417_s11  ;;  %p423_p12 = scmp.lt.s32.totalorder %s417_s11, %s417_s11 }
  0x1e   :  { %p424_p13 = por %p423_p12, %p422_p11 }
  0x20   :  { %p425_p0 = pnand %p424_p13, %p418_p10 }
  0x22   :  { %428 = shalt.err (!%p425_p0)
}
  0x23   :  { %s492_s1 = smov 256   ;;  %s493_s12 = smov 16  }
  0x24   :  { %50 = dma.hbm_to_vmem [thread:$0]  %s557_s2, 2048, %s45_s7, [#allocation7], %s492_s1, %s492_s1, %s493_s12  }
  0x25   :  { %s494_s15 = smov [#allocation9]  }
  0x26   :  { %s59_s16 = sshll.u32 %s494_s15, 4  ;;  %s60_s16 = int_to_ptr.vmem [resolvable:$true] %s59_s16 }
  0x27   :  { %s437_s17 = scalar_lea.vmem %s60_s16, 128  ;;  %p442_p2 = scmp.lt.s32.totalorder %s60_s16, %s60_s16 }
  0x28   :  { %p438_p1 = scmp.ne.s32.totalorder %s60_s16, %s437_s17  ;;  %p443_p3 = scmp.lt.s32.totalorder %s437_s17, %s437_s17 }
  0x2a   :  { %p444_p4 = por %p443_p3, %p442_p2 }
  0x2c   :  { %p445_p5 = pnand %p444_p4, %p438_p1 }
  0x2e   :  { %448 = shalt.err (!%p445_p5)
}
  0x2f   :  { %62 = dma.hbm_to_vmem [thread:$0]  %s559_s4, 128, %s60_s16, [#allocation10]  }
  0x30   :  { %477 = dma.done.wait [#allocation3], 128  }
  0x31   :  { %478 = vsyncadd [#allocation3], 4294967168 }
  0x32   :  { %479 = dma.done.wait [#allocation7], 2688  }
  0x33   :  { %480 = vsyncadd [#allocation7], 4294964608 }
  0x34   :  { %481 = dma.done.wait [#allocation10], 128  }
  0x35   :  { %482 = vsyncadd [#allocation10], 4294967168  ;;  %v495_v0 = vmov 0.0   ;;  %vm496_vm0 = vmmov 0   ;;  %v80_v1 = vld [vmem:[#allocation6 + $0x20] sm:$0xff]  ;;  %v79_v2 = vld [vmem:[#allocation6 + $0x18] sm:$0xff]  ;;  %v174_v26 = vlaneseq }
  0x36   :  { %339 = vmatprep.subr.mxu0 %v495_v0  ;;  %349 = vmatprep.mubr.msk.f32.mxu0 %vm496_vm0, %v495_v0  ;;  %v78_v3 = vld [vmem:[#allocation6 + $0x10] sm:$0xff]  ;;  %v171_v4 = vld [vmem:[#allocation8 + $0x78] sm:$0xff]  ;;  %v170_v5 = vld [vmem:[#allocation8 + $0x70] sm:$0xff]  ;;  %vm81_vm1 = vcmask 326656   ;;  %vm184_vm2 = vcmask 523264  }
  0x37   :  { %252 = vmatprep.mubr.f32.mxu1 %v495_v0  ;;  %340 = vmatpush3.msra.mxu0 %v80_v1  ;;  %v169_v6 = vld [vmem:[#allocation8 + $0x68] sm:$0xff]  ;;  %v168_v7 = vld [vmem:[#allocation8 + $0x60] sm:$0xff]  ;;  %v167_v9 = vld [vmem:[#allocation8 + $0x58] sm:$0xff]  ;;  %v175_v27 = vshrl.u32 %v174_v26, 7  ;;  %v271_v43 = vand.u32 127, %v174_v26 }
  0x38   :  { %341 = vmatprep.subr.mxu0 %v495_v0  ;;  %204 = vmatprep.subr.mxu1 %v171_v4  ;;  %v77_v8 = vld [vmem:[#allocation6 + $0x8] sm:$0xff]  ;;  %v166_v10 = vld [vmem:[#allocation8 + $0x50] sm:$0xff]  ;;  %v76_v11 = vld [vmem:[#allocation6] sm:$0xff] }
  0x39   :  { %342 = vmatpush3.msra.mxu0 %v79_v2  ;;  %205 = vmatpush1.msra.mxu1 %v170_v5  ;;  %v165_v12 = vld [vmem:[#allocation8 + $0x48] sm:$0xff]  ;;  %v75_v13 = vld [vmem:[#allocation2] sm:$0xff]  ;;  %v164_v14 = vld [vmem:[#allocation8 + $0x40] sm:$0xff]  ;;  %v180_v28 = vsub.s32 1, %v175_v27  ;;  %v176_v35 = vsub.s32 0, %v175_v27  ;;  %vm273_vm3 = vcmp.lt.s32.totalorder %v271_v43, 16 }
  0x3a   :  { %343 = vmatprep.subr.mxu0 %v495_v0  ;;  %206 = vmatprep.subr.mxu1 %v169_v6  ;;  %v163_v15 = vld [vmem:[#allocation8 + $0x38] sm:$0xff]  ;;  %v162_v16 = vld [vmem:[#allocation8 + $0x30] sm:$0xff]  ;;  %v161_v17 = vld [vmem:[#allocation8 + $0x28] sm:$0xff] }
  0x3b   :  { %344 = vmatpush3.msra.mxu0 %v78_v3  ;;  %207 = vmatpush1.msra.mxu1 %v168_v7  ;;  %v160_v18 = vld [vmem:[#allocation8 + $0x20] sm:$0xff]  ;;  %v159_v19 = vld [vmem:[#allocation8 + $0x18] sm:$0xff]  ;;  %v158_v20 = vld [vmem:[#allocation8 + $0x10] sm:$0xff] }
  0x3c   :  { %345 = vmatprep.subr.mxu0 %v495_v0  ;;  %208 = vmatprep.subr.mxu1 %v167_v9  ;;  %v157_v21 = vld [vmem:[#allocation8 + $0x8] sm:$0xff]  ;;  %v156_v22 = vld [vmem:[#allocation8] sm:$0xff]  ;;  %v172_v29 = vld [vmem:[%s558_s3] sm:$0x3]  ;;  %s497_s3 = smov [#allocation11]  }
  0x3d   :  { %346 = vmatpush3.msra.mxu0 %v77_v8  ;;  %209 = vmatpush1.msra.mxu1 %v166_v10  ;;  %v181_v30 = vrot.slane %v172_v29, %v180_v28  ;;  %v177_v36 = vrot.slane %v172_v29, %v176_v35  ;;  %v261_v38 = vld [vmem:[#allocation9] sm:$0xff]  ;;  %s306_s19 = sshll.u32 %s497_s3, 4  ;;  %s307_s19 = int_to_ptr.vmem [resolvable:$true] %s306_s19 }
  0x3e   :  { %347 = vmatprep.subr.mxu0 %v495_v0  ;;  %210 = vmatprep.subr.mxu1 %v165_v12  ;;  %s449_s20 = scalar_lea.vmem %s307_s19, 128  ;;  %p454_p7 = scmp.lt.s32.totalorder %s307_s19, %s307_s19 }
  0x3f   :  { %348 = vmatpush3.msra.mxu0 %v76_v11  ;;  %211 = vmatpush1.msra.mxu1 %v164_v14  ;;  %p450_p6 = scmp.ne.s32.totalorder %s307_s19, %s449_s20  ;;  %p455_p8 = scmp.lt.s32.totalorder %s449_s20, %s449_s20 }
  0x40   :  { %350 = vmatmul.mubr.msk.f32.vlgmr.msra.gmra.mxu0 %vm81_vm1, %v75_v13  ;;  %212 = vmatprep.subr.mxu1 %v163_v15 }
  0x41   :  { %213 = vmatpush1.msra.mxu1 %v162_v16  ;;  %p456_p9 = por %p455_p8, %p454_p7 }
  0x42   :  { %214 = vmatprep.subr.mxu1 %v161_v17 }
  0x43   :  { %215 = vmatpush1.msra.mxu1 %v160_v18  ;;  %p457_p10 = pnand %p456_p9, %p450_p6 }
  0x44   :  { %216 = vmatprep.subr.mxu1 %v159_v19 }
  0x45   :  { %217 = vmatpush1.msra.mxu1 %v158_v20 }
  0x46   :  { %218 = vmatprep.subr.mxu1 %v157_v21 }
  0x47   :  { %219 = vmatpush1.msra.mxu1 %v156_v22 }
 0x100   :  { %v151_v23 = vpop.f32.mrf.mxu0 }
 0x101   :  { %v155_v24 = vmax.f32 %v151_v23, 0.0 }
 0x102   :  { %v351_v25 = vpop.f32.mrf.mxu0 }
 0x103   :  { %331 = vmatmul.mubr.msk.f32.vlgmr.msra.gmra.mxu1 %vm184_vm2, %v155_v24 }
 0x1c3   :  { %v254_v31 = vpop.f32.mrf.mxu1 }
 0x1c4   :  { %v255_v37 = vadd.f32 %v254_v31, %v177_v36 }
 0x1c5   :  { %v256_v32 = vpop.f32.mrf.mxu1 }
 0x1c6   :  { %v257_v33 = vadd.f32 %v256_v32, %v181_v30  ;;  %v276_v40 = vmul.f32 %v255_v37, %v255_v37 }
 0x1c8   :  { %v259_v34 = vmul.f32 1.442695, %v257_v33 }
 0x1ca   :  { %367 = vpow2.f32 %v259_v34 }
 0x1d7   :  { %v368_v39 = vpop.eup %367 }
 0x1d8   :  { %v275_v41 = vmul.f32 %v368_v39, %v368_v39  ;;  %v262_v42 = vmul.f32 %v368_v39, %v261_v38 }
 0x1da   :  { %v277_v44 = vadd.f32 %v276_v40, %v275_v41  ;;  %v263_v45 = vadd.f32 %v262_v42, %v255_v37 }
 0x1dc   :  { %v278_v46 = vsub.f32 %v277_v44, %v257_v33  ;;  %264 = vst [vmem:[#allocation11] sm:$0xff] %v263_v45 }
 0x1de   :  { %v332_v47 = vadd.f32 -0.5, %v278_v46 }
 0x1e0   :  { %v280_v48 = vsel %vm273_vm3, %v332_v47, 0.0 }
 0x1e1   :  { %281 = vadd.xlane.f32.xlu0 %v280_v48 }
 0x1e2   :  { %460 = shalt.err (!%p457_p10)
}
 0x1e3   :  { %309 = dma.vmem_to_hbm [thread:$0]  %s307_s19, 128, %s560_s5, [#allocation4]  }
 0x1e4   :  { %s498_s24 = smov [#allocation12]  }
 0x26a   :  { %v282_v49 = vpop.xlane.xlu0 %281 }
 0x26b   :  { %v283_v50 = vrot.slane %v282_v49, 4 }
 0x26d   :  { %v284_v51 = vadd.f32 %v283_v50, %v282_v49 }
 0x26f   :  { %v285_v52 = vrot.slane %v284_v51, 2 }
 0x271   :  { %v286_v53 = vadd.f32 %v285_v52, %v284_v51 }
 0x273   :  { %v287_v54 = vrot.slane %v286_v53, 1 }
 0x275   :  { %v288_v55 = vadd.f32 %v287_v54, %v286_v53 }
 0x277   :  { %352 = vpush %v288_v55 }
 0x2a8   :  { %s353_s23 = spop %352 }
 0x2a9   :  { %299 = sst [smem:[#allocation12]] %s353_s23 }
 0x2aa   :  { %317 = dma.smem_to_hbm %s498_s24, 16, %s561_s6, [#allocation5]  }
 0x2ab   :  { %483 = dma.done.wait [#allocation4], 128  }
 0x2ac   :  { %484 = vsyncadd [#allocation4], 4294967168 }
 0x2ad   :  { %485 = dma.done.wait [#allocation5], 16  }
 0x2ae   :  { %486 = vsyncadd [#allocation5], 4294967280 }
 0x2af   :  { %324 = sfence }
 0x2b0   :  { %325 = vsyncpa [#allocation3], 1 }
 0x2b1   :  { %326 = vsyncpa [#allocation7], 1 }
 0x2b2   :  { %327 = vsyncpa [#allocation10], 1 }
 0x2b3   :  { %328 = vsyncpa [#allocation4], 1 }
 0x2b4   :  { %329 = vsyncpa [#allocation5], 1 }

</bundles_post_ra>
